<compile_context>
chip_gen: v5e
topology: v5e:2x2
jax: 0.10.0
libtpu: 0.0.40
codegen_flags: <defaults>
</compile_context>

<pallas_src>
import jax
import jax.numpy as jnp
from jax.experimental import pallas as pl
from jax.experimental.pallas import tpu as pltpu

ALPHA = 0.7
BETA = 0.3
GAMMA = 4.0 / 3.0
SMOOTH = 1.0
_LOG2 = 0.6931471805599453


# --------------------------------------------------------------------------- #
# helpers
# --------------------------------------------------------------------------- #
def _scoped_vmem_bytes():
    """Generation-aware scoped-VMEM budget (v5e/v6e: 128 MiB phys, v7x: 64 MiB/TC)."""
    try:
        phys = int(pltpu.get_tpu_info().vmem_capacity_bytes)
    except Exception:
        phys = 64 * 1024 * 1024  # conservative default (v7x per-core VMEM)
    return int(min(32 * 1024 * 1024, max(16 * 1024 * 1024, phys // 2)))


def _plane_view(h, w):
    """Pick a lane-dense 2-D view (rows, lane) of one H*W channel plane such
    that lane is a multiple of 128 and rows is a multiple of 8 (or tiny)."""
    hw = h * w
    lanes = (512, 384, 256, 128)
    for lane in lanes:
        if hw % lane == 0 and (hw // lane) % 8 == 0:
            return hw // lane, lane
    for lane in lanes:
        if hw % lane == 0 and hw // lane <= 8:
            return hw // lane, lane
    for lane in lanes:
        if hw % lane == 0:
            return hw // lane, lane
    return h, w  # natural layout fallback (possibly lane-sparse)


def _pick_tile(rows, lane, itemsize, target_bytes):
    """Largest row tile that divides `rows`, is a multiple of 8 (or equals
    `rows`), and keeps one (tile, lane) block under `target_bytes`."""
    max_rows = max(1, int(target_bytes) // (lane * itemsize))
    if rows <= max_rows:
        return rows
    t = min((rows // 8) * 8, (max_rows // 8) * 8)
    while t >= 8:
        if rows % t == 0:
            return t
        t -= 8
    # TODO(synk): pathological row counts (huge and not 8-divisible) fall back
    #             to a single block per plane; fine for NeoPolyp-like shapes.
    return rows


# --------------------------------------------------------------------------- #
# kernel
# --------------------------------------------------------------------------- #
def _make_kernel(num_preds):
    """Kernel over (1, 1, tile, lane) blocks of each channel plane.  Accumulates
    9*num_preds + 2 partial-sum planes of shape (acc_rows, lane) into the
    VMEM-resident output block (accumulator pattern over the row-block axis)."""

    def kernel(*refs):
        pred_refs = refs[: 2 * num_preds]
        neo_gt_ref = refs[2 * num_preds]
        non_gt_ref = refs[2 * num_preds + 1]
        out_ref = refs[2 * num_preds + 2]

        acc_rows = out_ref.shape[2]
        f32 = jnp.float32

        @pl.when(pl.program_id(1) == 0)
        def _init():
            out_ref[...] = jnp.zeros_like(out_ref)

        def fold(x):
            # (tile, lane) -> (acc_rows, lane): vreg-aligned VALU adds only,
            # no cross-lane/sublane XLU work in the hot loop.
            t, l = x.shape
            if t == acc_rows:
                return x
            return jnp.sum(x.reshape(t // acc_rows, acc_rows, l), axis=0)

        def acc(idx, x):
            out_ref[0, idx] += fold(x)

        ngt = neo_gt_ref[0, 0].astype(f32)
        ogt = non_gt_ref[0, 0].astype(f32)
        pgt = ngt + ogt

        # ground-truth sums are prediction independent: accumulate them once.
        acc(9 * num_preds + 0, ngt)
        acc(9 * num_preds + 1, ogt)

        def sig_l1p_bce(x, t):
            # share exp(-|x|) between sigmoid and BCE-with-logits
            e = jnp.exp(-jnp.abs(x))
            l1p = jnp.log1p(e)
            inv = pl.reciprocal(1.0 + e, approx=True)  # EUP approx reciprocal
            sig = jnp.where(x >= 0.0, inv, e * inv)
            bce = jnp.maximum(x, 0.0) - x * t + l1p
            return sig, l1p, bce

        for p in range(num_preds):
            npr = pred_refs[2 * p][0, 0].astype(f32)
            opr = pred_refs[2 * p + 1][0, 0].astype(f32)

            sig_n, l1p_n, bce_n = sig_l1p_bce(npr, ngt)
            sig_o, l1p_o, bce_o = sig_l1p_bce(opr, ogt)

            # polyp logits are an elementwise select of (neo, non, 0), so its
            # sigmoid / log1p(exp(-|x|)) are selects too: zero extra EUP work.
            n_wins = npr > opr
            o_wins = opr > npr
            ppr = jnp.where(n_wins, npr, 0.0) + jnp.where(o_wins, opr, 0.0)
            sig_p = jnp.where(n_wins, sig_n, jnp.where(o_wins, sig_o, 0.5))
            l1p_p = jnp.where(n_wins, l1p_n, jnp.where(o_wins, l1p_o, _LOG2))
            bce_p = jnp.maximum(ppr, 0.0) - ppr * pgt + l1p_p

            for j, (sig, bce, tgt) in enumerate(
                ((sig_n, bce_n, ngt), (sig_o, bce_o, ogt), (sig_p, bce_p, pgt))
            ):
                base = 9 * p + 3 * j
                acc(base + 0, bce)        # BCE-with-logits sum
                acc(base + 1, sig * tgt)  # true positives
                acc(base + 2, sig)        # sum of sigmoid

    return kernel


# --------------------------------------------------------------------------- #
# wrapper
# --------------------------------------------------------------------------- #
def neounet_loss(y_prs, mask, *, block_target_bytes=None):
    """Equivalent of NeoUNetLoss.forward(y_prs, mask) (see NOTE at top)."""
    if not isinstance(y_prs, (list, tuple)):
        y_prs = [y_prs]
    num_preds = len(y_prs)
    B, _, H, W = y_prs[0].shape
    for y in y_prs:
        assert y.shape[0] == B and y.shape[2:] == (H, W)
    assert mask.shape[0] == B and mask.shape[2:] == (H, W) and mask.shape[1] >= 3

    rows, lane = _plane_view(H, W)

    # Free (contiguous) reshape: (B, C, H, W) -> (B, C, rows, lane).
    preds = [y.reshape(B, y.shape[1], rows, lane) for y in y_prs]
    mask_r = mask.reshape(B, mask.shape[1], rows, lane)

    itemsize = max([p.dtype.itemsize for p in preds] + [mask_r.dtype.itemsize])
    n_inputs = 2 * num_preds + 2

    scoped = _scoped_vmem_bytes()
    if block_target_bytes is None:
        # keep (n_inputs double-buffered blocks) under ~half the scoped limit
        block_target_bytes = max(
            256 * 1024, min(4 * 1024 * 1024, (scoped // 2) // (2 * n_inputs))
        )
    tile = _pick_tile(rows, lane, itemsize, block_target_bytes)
    n_row_blocks = rows // tile
    acc_rows = 8 if (tile % 8 == 0 and tile >= 8) else tile
    nacc = 9 * num_preds + 2

    def chan_spec(ch):
        return pl.BlockSpec((1, 1, tile, lane), lambda b, i: (b, ch, i, 0))

    in_specs = []
    operands = []
    for p in preds:
        in_specs += [chan_spec(0), chan_spec(1)]  # neo / non logits
        operands += [p, p]
    in_specs += [chan_spec(1), chan_spec(2)]      # neo / non ground truth
    operands += [mask_r, mask_r]

    out_spec = pl.BlockSpec((1, nacc, acc_rows, lane), lambda b, i: (b, 0, 0, 0))

    partials = pl.pallas_call(
        _make_kernel(num_preds),
        out_shape=jax.ShapeDtypeStruct((B, nacc, acc_rows, lane), jnp.float32),
        grid=(B, n_row_blocks),
        in_specs=in_specs,
        out_specs=out_spec,
        compiler_params=pltpu.CompilerParams(
            dimension_semantics=("parallel", "arbitrary"),
            vmem_limit_bytes=scoped,
        ),
    )(*operands)

    # tiny final reduction + scalar epilogue in plain JAX
    sums = jnp.sum(partials, axis=(0, 2, 3))  # (nacc,)

    n_elem = jnp.float32(B * rows * lane)
    neo_t = sums[9 * num_preds + 0]
    non_t = sums[9 * num_preds + 1]
    pol_t = neo_t + non_t

    total = jnp.float32(0.0)
    for p in range(num_preds):
        for j, t_sum in enumerate((neo_t, non_t, pol_t)):
            base = 9 * p + 3 * j
            bce_mean = sums[base + 0] / n_elem
            tp = sums[base + 1]
            fp = sums[base + 2] - tp
            fn = t_sum - tp
            score = (tp + SMOOTH) / (tp + ALPHA * fp + BETA * fn + SMOOTH)
            total = total + bce_mean + (1.0 - score) ** GAMMA
    return total / num_preds


# ---------------- pure-JAX reference (for verification only) ---------------- #
def _ref_loss(y_prs, mask):
    def bce_mean(x, t):
        return jnp.mean(jnp.maximum(x, 0.0) - x * t + jnp.log1p(jnp.exp(-jnp.abs(x))))

    def ftl(x, t):
        s = jax.nn.sigmoid(x)
        tp = jnp.sum(s * t)
        fp = jnp.sum(s) - tp
        fn = jnp.sum(t) - tp
        score = (tp + SMOOTH) / (tp + ALPHA * fp + BETA * fn + SMOOTH)
        return (1.0 - score) ** GAMMA

    neo_gt = mask[:, 1].astype(jnp.float32)
    non_gt = mask[:, 2].astype(jnp.float32)
    polyp_gt = neo_gt + non_gt
    total = jnp.float32(0.0)
    for y in y_prs:
        npr = y[:, 0].astype(jnp.float32)
        opr = y[:, 1].astype(jnp.float32)
        ppr = jnp.where(npr > opr, npr, 0.0) + jnp.where(opr > npr, opr, 0.0)
        total = total + (bce_mean(npr, neo_gt) + ftl(npr, neo_gt)
                         + bce_mean(opr, non_gt) + ftl(opr, non_gt)
                         + bce_mean(ppr, polyp_gt) + ftl(ppr, polyp_gt)) / len(y_prs)
    return total


if __name__ == "__main__":
    key = jax.random.PRNGKey(0)
    k1, k2, k3, k4, k5, k6 = jax.random.split(key, 6)

    # --- test 1: small toy shapes (B=2, C=3, H=W=16), two predictions -------
    B, C, H, W = 2, 3, 16, 16
    y_pr1 = jax.random.normal(k1, (B, C, H, W), jnp.float32)
    y_pr2 = jax.random.normal(k2, (B, C, H, W), jnp.float32)
    cls = jax.random.randint(k3, (B, H, W), 0, 3)
    mask = jax.nn.one_hot(cls, 3, axis=1, dtype=jnp.float32)
    y_prs = [y_pr1, y_pr2]

    out = jax.block_until_ready(neounet_loss(y_prs, mask))
    ref = _ref_loss(y_prs, mask)
    assert jnp.allclose(out, ref, rtol=5e-3, atol=5e-3), (float(out), float(ref))

    # --- test 2: multi-block grid + fold path + bf16 logits -----------------
    B2, H2, W2 = 2, 128, 128
    y_pr3 = jax.random.normal(k4, (B2, C, H2, W2), jnp.float32).astype(jnp.bfloat16)
    y_pr4 = jax.random.normal(k5, (B2, C, H2, W2), jnp.float32).astype(jnp.bfloat16)
    cls2 = jax.random.randint(k6, (B2, H2, W2), 0, 3)
    mask2 = jax.nn.one_hot(cls2, 3, axis=1, dtype=jnp.float32)
    y_prs2 = [y_pr3, y_pr4]

    out2 = jax.block_until_ready(
        neounet_loss(y_prs2, mask2, block_target_bytes=16 * 512 * 4))
    ref2 = _ref_loss(y_prs2, mask2)
    assert jnp.allclose(out2, ref2, rtol=5e-3, atol=5e-3), (float(out2), float(ref2))

    print("KERNEL_OK")
</pallas_src>

<mosaic_0001>
module attributes {stable_mosaic.version = 11 : i64} {
  func.func @kernel(%arg0: i32, %arg1: i32, %arg2: memref<1x1x1x256xf32, #tpu.memory_space<vmem>>, %arg3: memref<1x1x1x256xf32, #tpu.memory_space<vmem>>, %arg4: memref<1x1x1x256xf32, #tpu.memory_space<vmem>>, %arg5: memref<1x1x1x256xf32, #tpu.memory_space<vmem>>, %arg6: memref<1x1x1x256xf32, #tpu.memory_space<vmem>>, %arg7: memref<1x1x1x256xf32, #tpu.memory_space<vmem>>, %arg8: memref<1x20x1x256xf32, #tpu.memory_space<vmem>>) attributes {dimension_semantics = [#tpu.dimension_semantics<parallel>, #tpu.dimension_semantics<arbitrary>], iteration_bounds = array<i64: 2, 1>, scalar_prefetch = 0 : i64, scratch_operands = 0 : i64, tpu.core_type = #tpu.core_type<tc>, window_params = [{transform_indices = @transform_0, window_bounds = array<i64: 1, 1, 1, 256>}, {transform_indices = @transform_1, window_bounds = array<i64: 1, 1, 1, 256>}, {transform_indices = @transform_2, window_bounds = array<i64: 1, 1, 1, 256>}, {transform_indices = @transform_3, window_bounds = array<i64: 1, 1, 1, 256>}, {transform_indices = @transform_4, window_bounds = array<i64: 1, 1, 1, 256>}, {transform_indices = @transform_5, window_bounds = array<i64: 1, 1, 1, 256>}, {transform_indices = @transform_6, window_bounds = array<i64: 1, 20, 1, 256>}]} {
    %c0_i32 = arith.constant 0 : i32
    %0 = arith.cmpi eq, %arg1, %c0_i32 : i32
    %1 = arith.extui %0 : i1 to i32
    %c0_i32_0 = arith.constant 0 : i32
    %2 = arith.cmpi ne, %1, %c0_i32_0 : i32
    scf.if %2 {
      %cst_190 = arith.constant 0.000000e+00 : f32
      %246 = vector.broadcast %cst_190 : f32 to vector<1x20x1x256xf32>
      %c0_191 = arith.constant 0 : index
      %c0_192 = arith.constant 0 : index
      %c0_193 = arith.constant 0 : index
      %c0_194 = arith.constant 0 : index
      %247 = vector.load %arg8[%c0_191, %c0_192, %c0_193, %c0_194] : memref<1x20x1x256xf32, #tpu.memory_space<vmem>>, vector<1x20x1x256xf32>
      tpu.vector_store %arg8[%c0_191, %c0_192, %c0_193, %c0_194], %246 {strides = array<i32>} : memref<1x20x1x256xf32, #tpu.memory_space<vmem>>, vector<1x20x1x256xf32>,
    } else {
    }
    %c0 = arith.constant 0 : index
    %c0_1 = arith.constant 0 : index
    %c0_2 = arith.constant 0 : index
    %c0_3 = arith.constant 0 : index
    %3 = vector.load %arg6[%c0, %c0_1, %c0_2, %c0_3] : memref<1x1x1x256xf32, #tpu.memory_space<vmem>>, vector<1x1x1x256xf32>
    %4 = vector.shape_cast %3 : vector<1x1x1x256xf32> to vector<1x256xf32>
    %c0_4 = arith.constant 0 : index
    %c0_5 = arith.constant 0 : index
    %c0_6 = arith.constant 0 : index
    %c0_7 = arith.constant 0 : index
    %5 = vector.load %arg7[%c0_4, %c0_5, %c0_6, %c0_7] : memref<1x1x1x256xf32, #tpu.memory_space<vmem>>, vector<1x1x1x256xf32>
    %6 = vector.shape_cast %5 : vector<1x1x1x256xf32> to vector<1x256xf32>
    %7 = arith.addf %4, %6 : vector<1x256xf32>
    %c0_8 = arith.constant 0 : index
    %c18 = arith.constant 18 : index
    %c0_9 = arith.constant 0 : index
    %c0_10 = arith.constant 0 : index
    %8 = vector.load %arg8[%c0_8, %c18, %c0_9, %c0_10] : memref<1x20x1x256xf32, #tpu.memory_space<vmem>>, vector<1x1x1x256xf32>
    %9 = vector.shape_cast %8 : vector<1x1x1x256xf32> to vector<1x256xf32>
    %10 = arith.addf %9, %4 : vector<1x256xf32>
    %c0_11 = arith.constant 0 : index
    %c18_12 = arith.constant 18 : index
    %c0_13 = arith.constant 0 : index
    %c0_14 = arith.constant 0 : index
    %11 = vector.load %arg8[%c0_11, %c18_12, %c0_13, %c0_14] : memref<1x20x1x256xf32, #tpu.memory_space<vmem>>, vector<1x1x1x256xf32>
    %12 = vector.shape_cast %11 : vector<1x1x1x256xf32> to vector<1x256xf32>
    %13 = vector.shape_cast %10 : vector<1x256xf32> to vector<1x1x1x256xf32>
    tpu.vector_store %arg8[%c0_11, %c18_12, %c0_13, %c0_14], %13 {strides = array<i32>} : memref<1x20x1x256xf32, #tpu.memory_space<vmem>>, vector<1x1x1x256xf32>,
    %c0_15 = arith.constant 0 : index
    %c19 = arith.constant 19 : index
    %c0_16 = arith.constant 0 : index
    %c0_17 = arith.constant 0 : index
    %14 = vector.load %arg8[%c0_15, %c19, %c0_16, %c0_17] : memref<1x20x1x256xf32, #tpu.memory_space<vmem>>, vector<1x1x1x256xf32>
    %15 = vector.shape_cast %14 : vector<1x1x1x256xf32> to vector<1x256xf32>
    %16 = arith.addf %15, %6 : vector<1x256xf32>
    %c0_18 = arith.constant 0 : index
    %c19_19 = arith.constant 19 : index
    %c0_20 = arith.constant 0 : index
    %c0_21 = arith.constant 0 : index
    %17 = vector.load %arg8[%c0_18, %c19_19, %c0_20, %c0_21] : memref<1x20x1x256xf32, #tpu.memory_space<vmem>>, vector<1x1x1x256xf32>
    %18 = vector.shape_cast %17 : vector<1x1x1x256xf32> to vector<1x256xf32>
    %19 = vector.shape_cast %16 : vector<1x256xf32> to vector<1x1x1x256xf32>
    tpu.vector_store %arg8[%c0_18, %c19_19, %c0_20, %c0_21], %19 {strides = array<i32>} : memref<1x20x1x256xf32, #tpu.memory_space<vmem>>, vector<1x1x1x256xf32>,
    %c0_22 = arith.constant 0 : index
    %c0_23 = arith.constant 0 : index
    %c0_24 = arith.constant 0 : index
    %c0_25 = arith.constant 0 : index
    %20 = vector.load %arg2[%c0_22, %c0_23, %c0_24, %c0_25] : memref<1x1x1x256xf32, #tpu.memory_space<vmem>>, vector<1x1x1x256xf32>
    %21 = vector.shape_cast %20 : vector<1x1x1x256xf32> to vector<1x256xf32>
    %c0_26 = arith.constant 0 : index
    %c0_27 = arith.constant 0 : index
    %c0_28 = arith.constant 0 : index
    %c0_29 = arith.constant 0 : index
    %22 = vector.load %arg3[%c0_26, %c0_27, %c0_28, %c0_29] : memref<1x1x1x256xf32, #tpu.memory_space<vmem>>, vector<1x1x1x256xf32>
    %23 = vector.shape_cast %22 : vector<1x1x1x256xf32> to vector<1x256xf32>
    %24 = math.absf %21 : vector<1x256xf32>
    %cst = arith.constant 0.000000e+00 : f32
    %25 = vector.broadcast %cst : f32 to vector<1x256xf32>
    %26 = arith.subf %25, %24 : vector<1x256xf32>
    %27 = math.exp %26 : vector<1x256xf32>
    %28 = math.log1p %27 : vector<1x256xf32>
    %cst_30 = arith.constant 1.000000e+00 : f32
    %29 = vector.broadcast %cst_30 : f32 to vector<1x256xf32>
    %30 = arith.addf %29, %27 : vector<1x256xf32>
    %31 = tpu.reciprocal %30 {approx = true} : vector<1x256xf32> -> vector<1x256xf32>
    %cst_31 = arith.constant 0.000000e+00 : f32
    %32 = vector.broadcast %cst_31 : f32 to vector<1x256xf32>
    %33 = arith.cmpf oge, %21, %32 : vector<1x256xf32>
    %34 = arith.mulf %27, %31 : vector<1x256xf32>
    %35 = arith.select %33, %31, %34 : vector<1x256xi1>, vector<1x256xf32>
    %cst_32 = arith.constant 0.000000e+00 : f32
    %36 = vector.broadcast %cst_32 : f32 to vector<1x256xf32>
    %37 = arith.maximumf %21, %36 : vector<1x256xf32>
    %38 = arith.mulf %21, %4 : vector<1x256xf32>
    %39 = arith.subf %37, %38 : vector<1x256xf32>
    %40 = arith.addf %39, %28 : vector<1x256xf32>
    %41 = math.absf %23 : vector<1x256xf32>
    %cst_33 = arith.constant 0.000000e+00 : f32
    %42 = vector.broadcast %cst_33 : f32 to vector<1x256xf32>
    %43 = arith.subf %42, %41 : vector<1x256xf32>
    %44 = math.exp %43 : vector<1x256xf32>
    %45 = math.log1p %44 : vector<1x256xf32>
    %cst_34 = arith.constant 1.000000e+00 : f32
    %46 = vector.broadcast %cst_34 : f32 to vector<1x256xf32>
    %47 = arith.addf %46, %44 : vector<1x256xf32>
    %48 = tpu.reciprocal %47 {approx = true} : vector<1x256xf32> -> vector<1x256xf32>
    %cst_35 = arith.constant 0.000000e+00 : f32
    %49 = vector.broadcast %cst_35 : f32 to vector<1x256xf32>
    %50 = arith.cmpf oge, %23, %49 : vector<1x256xf32>
    %51 = arith.mulf %44, %48 : vector<1x256xf32>
    %52 = arith.select %50, %48, %51 : vector<1x256xi1>, vector<1x256xf32>
    %cst_36 = arith.constant 0.000000e+00 : f32
    %53 = vector.broadcast %cst_36 : f32 to vector<1x256xf32>
    %54 = arith.maximumf %23, %53 : vector<1x256xf32>
    %55 = arith.mulf %23, %6 : vector<1x256xf32>
    %56 = arith.subf %54, %55 : vector<1x256xf32>
    %57 = arith.addf %56, %45 : vector<1x256xf32>
    %58 = arith.cmpf ogt, %21, %23 : vector<1x256xf32>
    %59 = arith.cmpf ogt, %23, %21 : vector<1x256xf32>
    %cst_37 = arith.constant 0.000000e+00 : f32
    %60 = vector.broadcast %cst_37 : f32 to vector<1x256xf32>
    %61 = arith.select %58, %21, %60 : vector<1x256xi1>, vector<1x256xf32>
    %cst_38 = arith.constant 0.000000e+00 : f32
    %62 = vector.broadcast %cst_38 : f32 to vector<1x256xf32>
    %63 = arith.select %59, %23, %62 : vector<1x256xi1>, vector<1x256xf32>
    %64 = arith.addf %61, %63 : vector<1x256xf32>
    %cst_39 = arith.constant 5.000000e-01 : f32
    %65 = vector.broadcast %cst_39 : f32 to vector<1x256xf32>
    %66 = arith.select %59, %52, %65 : vector<1x256xi1>, vector<1x256xf32>
    %67 = arith.select %58, %35, %66 : vector<1x256xi1>, vector<1x256xf32>
    %cst_40 = arith.constant 0.693147182 : f32
    %68 = vector.broadcast %cst_40 : f32 to vector<1x256xf32>
    %69 = arith.select %59, %45, %68 : vector<1x256xi1>, vector<1x256xf32>
    %70 = arith.select %58, %28, %69 : vector<1x256xi1>, vector<1x256xf32>
    %cst_41 = arith.constant 0.000000e+00 : f32
    %71 = vector.broadcast %cst_41 : f32 to vector<1x256xf32>
    %72 = arith.maximumf %64, %71 : vector<1x256xf32>
    %73 = arith.mulf %64, %7 : vector<1x256xf32>
    %74 = arith.subf %72, %73 : vector<1x256xf32>
    %75 = arith.addf %74, %70 : vector<1x256xf32>
    %c0_42 = arith.constant 0 : index
    %c0_43 = arith.constant 0 : index
    %c0_44 = arith.constant 0 : index
    %c0_45 = arith.constant 0 : index
    %76 = vector.load %arg8[%c0_42, %c0_43, %c0_44, %c0_45] : memref<1x20x1x256xf32, #tpu.memory_space<vmem>>, vector<1x1x1x256xf32>
    %77 = vector.shape_cast %76 : vector<1x1x1x256xf32> to vector<1x256xf32>
    %78 = arith.addf %77, %40 : vector<1x256xf32>
    %c0_46 = arith.constant 0 : index
    %c0_47 = arith.constant 0 : index
    %c0_48 = arith.constant 0 : index
    %c0_49 = arith.constant 0 : index
    %79 = vector.load %arg8[%c0_46, %c0_47, %c0_48, %c0_49] : memref<1x20x1x256xf32, #tpu.memory_space<vmem>>, vector<1x1x1x256xf32>
    %80 = vector.shape_cast %79 : vector<1x1x1x256xf32> to vector<1x256xf32>
    %81 = vector.shape_cast %78 : vector<1x256xf32> to vector<1x1x1x256xf32>
    tpu.vector_store %arg8[%c0_46, %c0_47, %c0_48, %c0_49], %81 {strides = array<i32>} : memref<1x20x1x256xf32, #tpu.memory_space<vmem>>, vector<1x1x1x256xf32>,
    %82 = arith.mulf %35, %4 : vector<1x256xf32>
    %c0_50 = arith.constant 0 : index
    %c1 = arith.constant 1 : index
    %c0_51 = arith.constant 0 : index
    %c0_52 = arith.constant 0 : index
    %83 = vector.load %arg8[%c0_50, %c1, %c0_51, %c0_52] : memref<1x20x1x256xf32, #tpu.memory_space<vmem>>, vector<1x1x1x256xf32>
    %84 = vector.shape_cast %83 : vector<1x1x1x256xf32> to vector<1x256xf32>
    %85 = arith.addf %84, %82 : vector<1x256xf32>
    %c0_53 = arith.constant 0 : index
    %c1_54 = arith.constant 1 : index
    %c0_55 = arith.constant 0 : index
    %c0_56 = arith.constant 0 : index
    %86 = vector.load %arg8[%c0_53, %c1_54, %c0_55, %c0_56] : memref<1x20x1x256xf32, #tpu.memory_space<vmem>>, vector<1x1x1x256xf32>
    %87 = vector.shape_cast %86 : vector<1x1x1x256xf32> to vector<1x256xf32>
    %88 = vector.shape_cast %85 : vector<1x256xf32> to vector<1x1x1x256xf32>
    tpu.vector_store %arg8[%c0_53, %c1_54, %c0_55, %c0_56], %88 {strides = array<i32>} : memref<1x20x1x256xf32, #tpu.memory_space<vmem>>, vector<1x1x1x256xf32>,
    %c0_57 = arith.constant 0 : index
    %c2 = arith.constant 2 : index
    %c0_58 = arith.constant 0 : index
    %c0_59 = arith.constant 0 : index
    %89 = vector.load %arg8[%c0_57, %c2, %c0_58, %c0_59] : memref<1x20x1x256xf32, #tpu.memory_space<vmem>>, vector<1x1x1x256xf32>
    %90 = vector.shape_cast %89 : vector<1x1x1x256xf32> to vector<1x256xf32>
    %91 = arith.addf %90, %35 : vector<1x256xf32>
    %c0_60 = arith.constant 0 : index
    %c2_61 = arith.constant 2 : index
    %c0_62 = arith.constant 0 : index
    %c0_63 = arith.constant 0 : index
    %92 = vector.load %arg8[%c0_60, %c2_61, %c0_62, %c0_63] : memref<1x20x1x256xf32, #tpu.memory_space<vmem>>, vector<1x1x1x256xf32>
    %93 = vector.shape_cast %92 : vector<1x1x1x256xf32> to vector<1x256xf32>
    %94 = vector.shape_cast %91 : vector<1x256xf32> to vector<1x1x1x256xf32>
    tpu.vector_store %arg8[%c0_60, %c2_61, %c0_62, %c0_63], %94 {strides = array<i32>} : memref<1x20x1x256xf32, #tpu.memory_space<vmem>>, vector<1x1x1x256xf32>,
    %c0_64 = arith.constant 0 : index
    %c3 = arith.constant 3 : index
    %c0_65 = arith.constant 0 : index
    %c0_66 = arith.constant 0 : index
    %95 = vector.load %arg8[%c0_64, %c3, %c0_65, %c0_66] : memref<1x20x1x256xf32, #tpu.memory_space<vmem>>, vector<1x1x1x256xf32>
    %96 = vector.shape_cast %95 : vector<1x1x1x256xf32> to vector<1x256xf32>
    %97 = arith.addf %96, %57 : vector<1x256xf32>
    %c0_67 = arith.constant 0 : index
    %c3_68 = arith.constant 3 : index
    %c0_69 = arith.constant 0 : index
    %c0_70 = arith.constant 0 : index
    %98 = vector.load %arg8[%c0_67, %c3_68, %c0_69, %c0_70] : memref<1x20x1x256xf32, #tpu.memory_space<vmem>>, vector<1x1x1x256xf32>
    %99 = vector.shape_cast %98 : vector<1x1x1x256xf32> to vector<1x256xf32>
    %100 = vector.shape_cast %97 : vector<1x256xf32> to vector<1x1x1x256xf32>
    tpu.vector_store %arg8[%c0_67, %c3_68, %c0_69, %c0_70], %100 {strides = array<i32>} : memref<1x20x1x256xf32, #tpu.memory_space<vmem>>, vector<1x1x1x256xf32>,
    %101 = arith.mulf %52, %6 : vector<1x256xf32>
    %c0_71 = arith.constant 0 : index
    %c4 = arith.constant 4 : index
    %c0_72 = arith.constant 0 : index
    %c0_73 = arith.constant 0 : index
    %102 = vector.load %arg8[%c0_71, %c4, %c0_72, %c0_73] : memref<1x20x1x256xf32, #tpu.memory_space<vmem>>, vector<1x1x1x256xf32>
    %103 = vector.shape_cast %102 : vector<1x1x1x256xf32> to vector<1x256xf32>
    %104 = arith.addf %103, %101 : vector<1x256xf32>
    %c0_74 = arith.constant 0 : index
    %c4_75 = arith.constant 4 : index
    %c0_76 = arith.constant 0 : index
    %c0_77 = arith.constant 0 : index
    %105 = vector.load %arg8[%c0_74, %c4_75, %c0_76, %c0_77] : memref<1x20x1x256xf32, #tpu.memory_space<vmem>>, vector<1x1x1x256xf32>
    %106 = vector.shape_cast %105 : vector<1x1x1x256xf32> to vector<1x256xf32>
    %107 = vector.shape_cast %104 : vector<1x256xf32> to vector<1x1x1x256xf32>
    tpu.vector_store %arg8[%c0_74, %c4_75, %c0_76, %c0_77], %107 {strides = array<i32>} : memref<1x20x1x256xf32, #tpu.memory_space<vmem>>, vector<1x1x1x256xf32>,
    %c0_78 = arith.constant 0 : index
    %c5 = arith.constant 5 : index
    %c0_79 = arith.constant 0 : index
    %c0_80 = arith.constant 0 : index
    %108 = vector.load %arg8[%c0_78, %c5, %c0_79, %c0_80] : memref<1x20x1x256xf32, #tpu.memory_space<vmem>>, vector<1x1x1x256xf32>
    %109 = vector.shape_cast %108 : vector<1x1x1x256xf32> to vector<1x256xf32>
    %110 = arith.addf %109, %52 : vector<1x256xf32>
    %c0_81 = arith.constant 0 : index
    %c5_82 = arith.constant 5 : index
    %c0_83 = arith.constant 0 : index
    %c0_84 = arith.constant 0 : index
    %111 = vector.load %arg8[%c0_81, %c5_82, %c0_83, %c0_84] : memref<1x20x1x256xf32, #tpu.memory_space<vmem>>, vector<1x1x1x256xf32>
    %112 = vector.shape_cast %111 : vector<1x1x1x256xf32> to vector<1x256xf32>
    %113 = vector.shape_cast %110 : vector<1x256xf32> to vector<1x1x1x256xf32>
    tpu.vector_store %arg8[%c0_81, %c5_82, %c0_83, %c0_84], %113 {strides = array<i32>} : memref<1x20x1x256xf32, #tpu.memory_space<vmem>>, vector<1x1x1x256xf32>,
    %c0_85 = arith.constant 0 : index
    %c6 = arith.constant 6 : index
    %c0_86 = arith.constant 0 : index
    %c0_87 = arith.constant 0 : index
    %114 = vector.load %arg8[%c0_85, %c6, %c0_86, %c0_87] : memref<1x20x1x256xf32, #tpu.memory_space<vmem>>, vector<1x1x1x256xf32>
    %115 = vector.shape_cast %114 : vector<1x1x1x256xf32> to vector<1x256xf32>
    %116 = arith.addf %115, %75 : vector<1x256xf32>
    %c0_88 = arith.constant 0 : index
    %c6_89 = arith.constant 6 : index
    %c0_90 = arith.constant 0 : index
    %c0_91 = arith.constant 0 : index
    %117 = vector.load %arg8[%c0_88, %c6_89, %c0_90, %c0_91] : memref<1x20x1x256xf32, #tpu.memory_space<vmem>>, vector<1x1x1x256xf32>
    %118 = vector.shape_cast %117 : vector<1x1x1x256xf32> to vector<1x256xf32>
    %119 = vector.shape_cast %116 : vector<1x256xf32> to vector<1x1x1x256xf32>
    tpu.vector_store %arg8[%c0_88, %c6_89, %c0_90, %c0_91], %119 {strides = array<i32>} : memref<1x20x1x256xf32, #tpu.memory_space<vmem>>, vector<1x1x1x256xf32>,
    %120 = arith.mulf %67, %7 : vector<1x256xf32>
    %c0_92 = arith.constant 0 : index
    %c7 = arith.constant 7 : index
    %c0_93 = arith.constant 0 : index
    %c0_94 = arith.constant 0 : index
    %121 = vector.load %arg8[%c0_92, %c7, %c0_93, %c0_94] : memref<1x20x1x256xf32, #tpu.memory_space<vmem>>, vector<1x1x1x256xf32>
    %122 = vector.shape_cast %121 : vector<1x1x1x256xf32> to vector<1x256xf32>
    %123 = arith.addf %122, %120 : vector<1x256xf32>
    %c0_95 = arith.constant 0 : index
    %c7_96 = arith.constant 7 : index
    %c0_97 = arith.constant 0 : index
    %c0_98 = arith.constant 0 : index
    %124 = vector.load %arg8[%c0_95, %c7_96, %c0_97, %c0_98] : memref<1x20x1x256xf32, #tpu.memory_space<vmem>>, vector<1x1x1x256xf32>
    %125 = vector.shape_cast %124 : vector<1x1x1x256xf32> to vector<1x256xf32>
    %126 = vector.shape_cast %123 : vector<1x256xf32> to vector<1x1x1x256xf32>
    tpu.vector_store %arg8[%c0_95, %c7_96, %c0_97, %c0_98], %126 {strides = array<i32>} : memref<1x20x1x256xf32, #tpu.memory_space<vmem>>, vector<1x1x1x256xf32>,
    %c0_99 = arith.constant 0 : index
    %c8 = arith.constant 8 : index
    %c0_100 = arith.constant 0 : index
    %c0_101 = arith.constant 0 : index
    %127 = vector.load %arg8[%c0_99, %c8, %c0_100, %c0_101] : memref<1x20x1x256xf32, #tpu.memory_space<vmem>>, vector<1x1x1x256xf32>
    %128 = vector.shape_cast %127 : vector<1x1x1x256xf32> to vector<1x256xf32>
    %129 = arith.addf %128, %67 : vector<1x256xf32>
    %c0_102 = arith.constant 0 : index
    %c8_103 = arith.constant 8 : index
    %c0_104 = arith.constant 0 : index
    %c0_105 = arith.constant 0 : index
    %130 = vector.load %arg8[%c0_102, %c8_103, %c0_104, %c0_105] : memref<1x20x1x256xf32, #tpu.memory_space<vmem>>, vector<1x1x1x256xf32>
    %131 = vector.shape_cast %130 : vector<1x1x1x256xf32> to vector<1x256xf32>
    %132 = vector.shape_cast %129 : vector<1x256xf32> to vector<1x1x1x256xf32>
    tpu.vector_store %arg8[%c0_102, %c8_103, %c0_104, %c0_105], %132 {strides = array<i32>} : memref<1x20x1x256xf32, #tpu.memory_space<vmem>>, vector<1x1x1x256xf32>,
    %c0_106 = arith.constant 0 : index
    %c0_107 = arith.constant 0 : index
    %c0_108 = arith.constant 0 : index
    %c0_109 = arith.constant 0 : index
    %133 = vector.load %arg4[%c0_106, %c0_107, %c0_108, %c0_109] : memref<1x1x1x256xf32, #tpu.memory_space<vmem>>, vector<1x1x1x256xf32>
    %134 = vector.shape_cast %133 : vector<1x1x1x256xf32> to vector<1x256xf32>
    %c0_110 = arith.constant 0 : index
    %c0_111 = arith.constant 0 : index
    %c0_112 = arith.constant 0 : index
    %c0_113 = arith.constant 0 : index
    %135 = vector.load %arg5[%c0_110, %c0_111, %c0_112, %c0_113] : memref<1x1x1x256xf32, #tpu.memory_space<vmem>>, vector<1x1x1x256xf32>
    %136 = vector.shape_cast %135 : vector<1x1x1x256xf32> to vector<1x256xf32>
    %137 = math.absf %134 : vector<1x256xf32>
    %cst_114 = arith.constant 0.000000e+00 : f32
    %138 = vector.broadcast %cst_114 : f32 to vector<1x256xf32>
    %139 = arith.subf %138, %137 : vector<1x256xf32>
    %140 = math.exp %139 : vector<1x256xf32>
    %141 = math.log1p %140 : vector<1x256xf32>
    %cst_115 = arith.constant 1.000000e+00 : f32
    %142 = vector.broadcast %cst_115 : f32 to vector<1x256xf32>
    %143 = arith.addf %142, %140 : vector<1x256xf32>
    %144 = tpu.reciprocal %143 {approx = true} : vector<1x256xf32> -> vector<1x256xf32>
    %cst_116 = arith.constant 0.000000e+00 : f32
    %145 = vector.broadcast %cst_116 : f32 to vector<1x256xf32>
    %146 = arith.cmpf oge, %134, %145 : vector<1x256xf32>
    %147 = arith.mulf %140, %144 : vector<1x256xf32>
    %148 = arith.select %146, %144, %147 : vector<1x256xi1>, vector<1x256xf32>
    %cst_117 = arith.constant 0.000000e+00 : f32
    %149 = vector.broadcast %cst_117 : f32 to vector<1x256xf32>
    %150 = arith.maximumf %134, %149 : vector<1x256xf32>
    %151 = arith.mulf %134, %4 : vector<1x256xf32>
    %152 = arith.subf %150, %151 : vector<1x256xf32>
    %153 = arith.addf %152, %141 : vector<1x256xf32>
    %154 = math.absf %136 : vector<1x256xf32>
    %cst_118 = arith.constant 0.000000e+00 : f32
    %155 = vector.broadcast %cst_118 : f32 to vector<1x256xf32>
    %156 = arith.subf %155, %154 : vector<1x256xf32>
    %157 = math.exp %156 : vector<1x256xf32>
    %158 = math.log1p %157 : vector<1x256xf32>
    %cst_119 = arith.constant 1.000000e+00 : f32
    %159 = vector.broadcast %cst_119 : f32 to vector<1x256xf32>
    %160 = arith.addf %159, %157 : vector<1x256xf32>
    %161 = tpu.reciprocal %160 {approx = true} : vector<1x256xf32> -> vector<1x256xf32>
    %cst_120 = arith.constant 0.000000e+00 : f32
    %162 = vector.broadcast %cst_120 : f32 to vector<1x256xf32>
    %163 = arith.cmpf oge, %136, %162 : vector<1x256xf32>
    %164 = arith.mulf %157, %161 : vector<1x256xf32>
    %165 = arith.select %163, %161, %164 : vector<1x256xi1>, vector<1x256xf32>
    %cst_121 = arith.constant 0.000000e+00 : f32
    %166 = vector.broadcast %cst_121 : f32 to vector<1x256xf32>
    %167 = arith.maximumf %136, %166 : vector<1x256xf32>
    %168 = arith.mulf %136, %6 : vector<1x256xf32>
    %169 = arith.subf %167, %168 : vector<1x256xf32>
    %170 = arith.addf %169, %158 : vector<1x256xf32>
    %171 = arith.cmpf ogt, %134, %136 : vector<1x256xf32>
    %172 = arith.cmpf ogt, %136, %134 : vector<1x256xf32>
    %cst_122 = arith.constant 0.000000e+00 : f32
    %173 = vector.broadcast %cst_122 : f32 to vector<1x256xf32>
    %174 = arith.select %171, %134, %173 : vector<1x256xi1>, vector<1x256xf32>
    %cst_123 = arith.constant 0.000000e+00 : f32
    %175 = vector.broadcast %cst_123 : f32 to vector<1x256xf32>
    %176 = arith.select %172, %136, %175 : vector<1x256xi1>, vector<1x256xf32>
    %177 = arith.addf %174, %176 : vector<1x256xf32>
    %cst_124 = arith.constant 5.000000e-01 : f32
    %178 = vector.broadcast %cst_124 : f32 to vector<1x256xf32>
    %179 = arith.select %172, %165, %178 : vector<1x256xi1>, vector<1x256xf32>
    %180 = arith.select %171, %148, %179 : vector<1x256xi1>, vector<1x256xf32>
    %cst_125 = arith.constant 0.693147182 : f32
    %181 = vector.broadcast %cst_125 : f32 to vector<1x256xf32>
    %182 = arith.select %172, %158, %181 : vector<1x256xi1>, vector<1x256xf32>
    %183 = arith.select %171, %141, %182 : vector<1x256xi1>, vector<1x256xf32>
    %cst_126 = arith.constant 0.000000e+00 : f32
    %184 = vector.broadcast %cst_126 : f32 to vector<1x256xf32>
    %185 = arith.maximumf %177, %184 : vector<1x256xf32>
    %186 = arith.mulf %177, %7 : vector<1x256xf32>
    %187 = arith.subf %185, %186 : vector<1x256xf32>
    %188 = arith.addf %187, %183 : vector<1x256xf32>
    %c0_127 = arith.constant 0 : index
    %c9 = arith.constant 9 : index
    %c0_128 = arith.constant 0 : index
    %c0_129 = arith.constant 0 : index
    %189 = vector.load %arg8[%c0_127, %c9, %c0_128, %c0_129] : memref<1x20x1x256xf32, #tpu.memory_space<vmem>>, vector<1x1x1x256xf32>
    %190 = vector.shape_cast %189 : vector<1x1x1x256xf32> to vector<1x256xf32>
    %191 = arith.addf %190, %153 : vector<1x256xf32>
    %c0_130 = arith.constant 0 : index
    %c9_131 = arith.constant 9 : index
    %c0_132 = arith.constant 0 : index
    %c0_133 = arith.constant 0 : index
    %192 = vector.load %arg8[%c0_130, %c9_131, %c0_132, %c0_133] : memref<1x20x1x256xf32, #tpu.memory_space<vmem>>, vector<1x1x1x256xf32>
    %193 = vector.shape_cast %192 : vector<1x1x1x256xf32> to vector<1x256xf32>
    %194 = vector.shape_cast %191 : vector<1x256xf32> to vector<1x1x1x256xf32>
    tpu.vector_store %arg8[%c0_130, %c9_131, %c0_132, %c0_133], %194 {strides = array<i32>} : memref<1x20x1x256xf32, #tpu.memory_space<vmem>>, vector<1x1x1x256xf32>,
    %195 = arith.mulf %148, %4 : vector<1x256xf32>
    %c0_134 = arith.constant 0 : index
    %c10 = arith.constant 10 : index
    %c0_135 = arith.constant 0 : index
    %c0_136 = arith.constant 0 : index
    %196 = vector.load %arg8[%c0_134, %c10, %c0_135, %c0_136] : memref<1x20x1x256xf32, #tpu.memory_space<vmem>>, vector<1x1x1x256xf32>
    %197 = vector.shape_cast %196 : vector<1x1x1x256xf32> to vector<1x256xf32>
    %198 = arith.addf %197, %195 : vector<1x256xf32>
    %c0_137 = arith.constant 0 : index
    %c10_138 = arith.constant 10 : index
    %c0_139 = arith.constant 0 : index
    %c0_140 = arith.constant 0 : index
    %199 = vector.load %arg8[%c0_137, %c10_138, %c0_139, %c0_140] : memref<1x20x1x256xf32, #tpu.memory_space<vmem>>, vector<1x1x1x256xf32>
    %200 = vector.shape_cast %199 : vector<1x1x1x256xf32> to vector<1x256xf32>
    %201 = vector.shape_cast %198 : vector<1x256xf32> to vector<1x1x1x256xf32>
    tpu.vector_store %arg8[%c0_137, %c10_138, %c0_139, %c0_140], %201 {strides = array<i32>} : memref<1x20x1x256xf32, #tpu.memory_space<vmem>>, vector<1x1x1x256xf32>,
    %c0_141 = arith.constant 0 : index
    %c11 = arith.constant 11 : index
    %c0_142 = arith.constant 0 : index
    %c0_143 = arith.constant 0 : index
    %202 = vector.load %arg8[%c0_141, %c11, %c0_142, %c0_143] : memref<1x20x1x256xf32, #tpu.memory_space<vmem>>, vector<1x1x1x256xf32>
    %203 = vector.shape_cast %202 : vector<1x1x1x256xf32> to vector<1x256xf32>
    %204 = arith.addf %203, %148 : vector<1x256xf32>
    %c0_144 = arith.constant 0 : index
    %c11_145 = arith.constant 11 : index
    %c0_146 = arith.constant 0 : index
    %c0_147 = arith.constant 0 : index
    %205 = vector.load %arg8[%c0_144, %c11_145, %c0_146, %c0_147] : memref<1x20x1x256xf32, #tpu.memory_space<vmem>>, vector<1x1x1x256xf32>
    %206 = vector.shape_cast %205 : vector<1x1x1x256xf32> to vector<1x256xf32>
    %207 = vector.shape_cast %204 : vector<1x256xf32> to vector<1x1x1x256xf32>
    tpu.vector_store %arg8[%c0_144, %c11_145, %c0_146, %c0_147], %207 {strides = array<i32>} : memref<1x20x1x256xf32, #tpu.memory_space<vmem>>, vector<1x1x1x256xf32>,
    %c0_148 = arith.constant 0 : index
    %c12 = arith.constant 12 : index
    %c0_149 = arith.constant 0 : index
    %c0_150 = arith.constant 0 : index
    %208 = vector.load %arg8[%c0_148, %c12, %c0_149, %c0_150] : memref<1x20x1x256xf32, #tpu.memory_space<vmem>>, vector<1x1x1x256xf32>
    %209 = vector.shape_cast %208 : vector<1x1x1x256xf32> to vector<1x256xf32>
    %210 = arith.addf %209, %170 : vector<1x256xf32>
    %c0_151 = arith.constant 0 : index
    %c12_152 = arith.constant 12 : index
    %c0_153 = arith.constant 0 : index
    %c0_154 = arith.constant 0 : index
    %211 = vector.load %arg8[%c0_151, %c12_152, %c0_153, %c0_154] : memref<1x20x1x256xf32, #tpu.memory_space<vmem>>, vector<1x1x1x256xf32>
    %212 = vector.shape_cast %211 : vector<1x1x1x256xf32> to vector<1x256xf32>
    %213 = vector.shape_cast %210 : vector<1x256xf32> to vector<1x1x1x256xf32>
    tpu.vector_store %arg8[%c0_151, %c12_152, %c0_153, %c0_154], %213 {strides = array<i32>} : memref<1x20x1x256xf32, #tpu.memory_space<vmem>>, vector<1x1x1x256xf32>,
    %214 = arith.mulf %165, %6 : vector<1x256xf32>
    %c0_155 = arith.constant 0 : index
    %c13 = arith.constant 13 : index
    %c0_156 = arith.constant 0 : index
    %c0_157 = arith.constant 0 : index
    %215 = vector.load %arg8[%c0_155, %c13, %c0_156, %c0_157] : memref<1x20x1x256xf32, #tpu.memory_space<vmem>>, vector<1x1x1x256xf32>
    %216 = vector.shape_cast %215 : vector<1x1x1x256xf32> to vector<1x256xf32>
    %217 = arith.addf %216, %214 : vector<1x256xf32>
    %c0_158 = arith.constant 0 : index
    %c13_159 = arith.constant 13 : index
    %c0_160 = arith.constant 0 : index
    %c0_161 = arith.constant 0 : index
    %218 = vector.load %arg8[%c0_158, %c13_159, %c0_160, %c0_161] : memref<1x20x1x256xf32, #tpu.memory_space<vmem>>, vector<1x1x1x256xf32>
    %219 = vector.shape_cast %218 : vector<1x1x1x256xf32> to vector<1x256xf32>
    %220 = vector.shape_cast %217 : vector<1x256xf32> to vector<1x1x1x256xf32>
    tpu.vector_store %arg8[%c0_158, %c13_159, %c0_160, %c0_161], %220 {strides = array<i32>} : memref<1x20x1x256xf32, #tpu.memory_space<vmem>>, vector<1x1x1x256xf32>,
    %c0_162 = arith.constant 0 : index
    %c14 = arith.constant 14 : index
    %c0_163 = arith.constant 0 : index
    %c0_164 = arith.constant 0 : index
    %221 = vector.load %arg8[%c0_162, %c14, %c0_163, %c0_164] : memref<1x20x1x256xf32, #tpu.memory_space<vmem>>, vector<1x1x1x256xf32>
    %222 = vector.shape_cast %221 : vector<1x1x1x256xf32> to vector<1x256xf32>
    %223 = arith.addf %222, %165 : vector<1x256xf32>
    %c0_165 = arith.constant 0 : index
    %c14_166 = arith.constant 14 : index
    %c0_167 = arith.constant 0 : index
    %c0_168 = arith.constant 0 : index
    %224 = vector.load %arg8[%c0_165, %c14_166, %c0_167, %c0_168] : memref<1x20x1x256xf32, #tpu.memory_space<vmem>>, vector<1x1x1x256xf32>
    %225 = vector.shape_cast %224 : vector<1x1x1x256xf32> to vector<1x256xf32>
    %226 = vector.shape_cast %223 : vector<1x256xf32> to vector<1x1x1x256xf32>
    tpu.vector_store %arg8[%c0_165, %c14_166, %c0_167, %c0_168], %226 {strides = array<i32>} : memref<1x20x1x256xf32, #tpu.memory_space<vmem>>, vector<1x1x1x256xf32>,
    %c0_169 = arith.constant 0 : index
    %c15 = arith.constant 15 : index
    %c0_170 = arith.constant 0 : index
    %c0_171 = arith.constant 0 : index
    %227 = vector.load %arg8[%c0_169, %c15, %c0_170, %c0_171] : memref<1x20x1x256xf32, #tpu.memory_space<vmem>>, vector<1x1x1x256xf32>
    %228 = vector.shape_cast %227 : vector<1x1x1x256xf32> to vector<1x256xf32>
    %229 = arith.addf %228, %188 : vector<1x256xf32>
    %c0_172 = arith.constant 0 : index
    %c15_173 = arith.constant 15 : index
    %c0_174 = arith.constant 0 : index
    %c0_175 = arith.constant 0 : index
    %230 = vector.load %arg8[%c0_172, %c15_173, %c0_174, %c0_175] : memref<1x20x1x256xf32, #tpu.memory_space<vmem>>, vector<1x1x1x256xf32>
    %231 = vector.shape_cast %230 : vector<1x1x1x256xf32> to vector<1x256xf32>
    %232 = vector.shape_cast %229 : vector<1x256xf32> to vector<1x1x1x256xf32>
    tpu.vector_store %arg8[%c0_172, %c15_173, %c0_174, %c0_175], %232 {strides = array<i32>} : memref<1x20x1x256xf32, #tpu.memory_space<vmem>>, vector<1x1x1x256xf32>,
    %233 = arith.mulf %180, %7 : vector<1x256xf32>
    %c0_176 = arith.constant 0 : index
    %c16 = arith.constant 16 : index
    %c0_177 = arith.constant 0 : index
    %c0_178 = arith.constant 0 : index
    %234 = vector.load %arg8[%c0_176, %c16, %c0_177, %c0_178] : memref<1x20x1x256xf32, #tpu.memory_space<vmem>>, vector<1x1x1x256xf32>
    %235 = vector.shape_cast %234 : vector<1x1x1x256xf32> to vector<1x256xf32>
    %236 = arith.addf %235, %233 : vector<1x256xf32>
    %c0_179 = arith.constant 0 : index
    %c16_180 = arith.constant 16 : index
    %c0_181 = arith.constant 0 : index
    %c0_182 = arith.constant 0 : index
    %237 = vector.load %arg8[%c0_179, %c16_180, %c0_181, %c0_182] : memref<1x20x1x256xf32, #tpu.memory_space<vmem>>, vector<1x1x1x256xf32>
    %238 = vector.shape_cast %237 : vector<1x1x1x256xf32> to vector<1x256xf32>
    %239 = vector.shape_cast %236 : vector<1x256xf32> to vector<1x1x1x256xf32>
    tpu.vector_store %arg8[%c0_179, %c16_180, %c0_181, %c0_182], %239 {strides = array<i32>} : memref<1x20x1x256xf32, #tpu.memory_space<vmem>>, vector<1x1x1x256xf32>,
    %c0_183 = arith.constant 0 : index
    %c17 = arith.constant 17 : index
    %c0_184 = arith.constant 0 : index
    %c0_185 = arith.constant 0 : index
    %240 = vector.load %arg8[%c0_183, %c17, %c0_184, %c0_185] : memref<1x20x1x256xf32, #tpu.memory_space<vmem>>, vector<1x1x1x256xf32>
    %241 = vector.shape_cast %240 : vector<1x1x1x256xf32> to vector<1x256xf32>
    %242 = arith.addf %241, %180 : vector<1x256xf32>
    %c0_186 = arith.constant 0 : index
    %c17_187 = arith.constant 17 : index
    %c0_188 = arith.constant 0 : index
    %c0_189 = arith.constant 0 : index
    %243 = vector.load %arg8[%c0_186, %c17_187, %c0_188, %c0_189] : memref<1x20x1x256xf32, #tpu.memory_space<vmem>>, vector<1x1x1x256xf32>
    %244 = vector.shape_cast %243 : vector<1x1x1x256xf32> to vector<1x256xf32>
    %245 = vector.shape_cast %242 : vector<1x256xf32> to vector<1x1x1x256xf32>
    tpu.vector_store %arg8[%c0_186, %c17_187, %c0_188, %c0_189], %245 {strides = array<i32>} : memref<1x20x1x256xf32, #tpu.memory_space<vmem>>, vector<1x1x1x256xf32>,
    return
  }
  func.func @transform_0(%arg0: i32, %arg1: i32) -> (i32, i32, i32, i32) {
    %c0_i32 = arith.constant 0 : i32
    %c0_i32_0 = arith.constant 0 : i32
    %c0_i32_1 = arith.constant 0 : i32
    return %arg0, %c0_i32, %arg1, %c0_i32_0 : i32, i32, i32, i32
  }
  func.func @transform_1(%arg0: i32, %arg1: i32) -> (i32, i32, i32, i32) {
    %c1_i32 = arith.constant 1 : i32
    %c0_i32 = arith.constant 0 : i32
    %c0_i32_0 = arith.constant 0 : i32
    return %arg0, %c1_i32, %arg1, %c0_i32 : i32, i32, i32, i32
  }
  func.func @transform_2(%arg0: i32, %arg1: i32) -> (i32, i32, i32, i32) {
    %c0_i32 = arith.constant 0 : i32
    %c0_i32_0 = arith.constant 0 : i32
    %c0_i32_1 = arith.constant 0 : i32
    return %arg0, %c0_i32, %arg1, %c0_i32_0 : i32, i32, i32, i32
  }
  func.func @transform_3(%arg0: i32, %arg1: i32) -> (i32, i32, i32, i32) {
    %c1_i32 = arith.constant 1 : i32
    %c0_i32 = arith.constant 0 : i32
    %c0_i32_0 = arith.constant 0 : i32
    return %arg0, %c1_i32, %arg1, %c0_i32 : i32, i32, i32, i32
  }
  func.func @transform_4(%arg0: i32, %arg1: i32) -> (i32, i32, i32, i32) {
    %c1_i32 = arith.constant 1 : i32
    %c0_i32 = arith.constant 0 : i32
    %c0_i32_0 = arith.constant 0 : i32
    return %arg0, %c1_i32, %arg1, %c0_i32 : i32, i32, i32, i32
  }
  func.func @transform_5(%arg0: i32, %arg1: i32) -> (i32, i32, i32, i32) {
    %c2_i32 = arith.constant 2 : i32
    %c0_i32 = arith.constant 0 : i32
    %c0_i32_0 = arith.constant 0 : i32
    return %arg0, %c2_i32, %arg1, %c0_i32 : i32, i32, i32, i32
  }
  func.func @transform_6(%arg0: i32, %arg1: i32) -> (i32, i32, i32, i32) {
    %c0_i32 = arith.constant 0 : i32
    %c0_i32_0 = arith.constant 0 : i32
    %c0_i32_1 = arith.constant 0 : i32
    %c0_i32_2 = arith.constant 0 : i32
    return %arg0, %c0_i32, %c0_i32_0, %c0_i32_1 : i32, i32, i32, i32
  }
}

</mosaic_0001>

<bundles_post_ra>
// kernel: tpu_custom_call.1
= control target key start
LH: loop header
LB: loop body
LE: loop exit
PB: predicated region body
PF: predicated region fallthrough
CT: control target
= control target key end

     0   :  { %s1935_s0 = inlined_call_operand.hbm [shape: f32[2,3,1,256], index: 0, kind: input, shape index: {}]   ;;  %s1936_s1 = inlined_call_operand.hbm [shape: f32[2,3,1,256], index: 1, kind: input, shape index: {}]   ;;  %s1937_s2 = inlined_call_operand.hbm [shape: f32[2,3,1,256], index: 2, kind: input, shape index: {}]   ;;  %s1938_s3 = inlined_call_operand.hbm [shape: f32[2,3,1,256], index: 3, kind: input, shape index: {}]   ;;  %s1939_s4 = inlined_call_operand.hbm [shape: f32[2,3,1,256], index: 4, kind: input, shape index: {}]   ;;  %s1940_s5 = inlined_call_operand.hbm [shape: f32[2,3,1,256], index: 5, kind: input, shape index: {}]   ;;  %s1941_s6 = inlined_call_operand.hbm [shape: f32[2,20,1,256], index: 6, kind: output, shape index: {}]  }
   0x1   :  { %1945 = sst [smem:[#allocation23_spill]] %s1935_s0 }
   0x2   :  { %1946 = sst [smem:[#allocation24_spill]] %s1936_s1 }
   0x3   :  { %1947 = sst [smem:[#allocation25_spill]] %s1937_s2 }
   0x4   :  { %1948 = sst [smem:[#allocation26_spill]] %s1938_s3 }
   0x5   :  { %11 = vsyncpa [#allocation3], 0 }
   0x6   :  { %13 = vsyncpa [#allocation3 + $0x1], 0 }
   0x7   :  { %14 = vsyncpa [#allocation6], 0 }
   0x8   :  { %16 = vsyncpa [#allocation6 + $0x1], 0 }
   0x9   :  { %17 = vsyncpa [#allocation9], 0 }
   0xa   :  { %19 = vsyncpa [#allocation9 + $0x1], 0 }
   0xb   :  { %20 = vsyncpa [#allocation12], 0 }
   0xc   :  { %22 = vsyncpa [#allocation12 + $0x1], 0 }
   0xd   :  { %23 = vsyncpa [#allocation4], 0 }
   0xe   :  { %25 = vsyncpa [#allocation4 + $0x1], 0  ;;  %s1446_s21 = smov 0   ;;  %s1448_s22 = smov 0  }
   0xf   :  { %s1450_s23 = smov 0   ;;  %s1452_s24 = smov 0  }
  0x10   :  { %s1454_s25 = smov 0   ;;  %s1456_s26 = smov 0  }
  0x11 LB: > { %1949 = sst [smem:[#allocation19_spill]] %s1394_s23  ;;  %s1477_s27 = sadd.s32 4294967295, %s1406_s26   ;;  %s1406_s26 = sphi %s1456_s26, %s31_s26   ;;  %s1402_s25 = sphi %s1454_s25, %s1972_s25   ;;  %s1398_s24 = sphi %s1452_s24, %s1971_s24   ;;  %s1394_s23 = sphi %s1450_s23, %s1970_s23   ;;  %s1390_s22 = sphi %s1448_s22, %s1974_s22   ;;  %s1386_s21 = sphi %s1446_s21, %s1973_s21  }
  0x12   : > { %1950 = sst [smem:[#allocation20_spill]] %s1402_s25  ;;  %s958_s28 = sadd.s32 4294967294, %s1406_s26  }
  0x13   : > { %s43_s29 = sadd.s32 1, %s1402_s25  ;;  %s52_s30 = sadd.s32 1, %s1394_s23 }
  0x14   : > { %p45_p0 = scmp.ge.s32.totalorder %s43_s29, 2  ;;  %p59_p1 = scmp.ne.s32.totalorder %s1394_s23, %s1390_s22 }
  0x15   : > { %p60_p2 = scmp.eq.s32.totalorder %s1406_s26, 0  ;;  %p65_p3 = scmp.ne.s32.totalorder %s1390_s22, %s1386_s21 }
  0x16   : > { %s1976_s29 = smov (%p45_p0, %s43_s29), 0  ;;  %p66_p5 = scmp.eq.s32.totalorder %s1477_s27, 0 }
  0x17   : > { %1951 = sst [smem:[#allocation21_spill]] %s1976_s29  ;;  %p1489_p4 = por %p60_p2, %p59_p1 }
  0x18   : > { %s47_s8 = ssub.s32 %s1402_s25, %s1976_s29  ;;  %p229_p6 = scmp.eq.s32.totalorder %s1477_s27, 1 }
  0x19   : > { %p50_p7 = scmp.eq.s32.totalorder %s47_s8, 0  ;;  %p1497_p8 = por %p66_p5, %p65_p3 }
  0x1a   : > { %p1501_p9 = por %p229_p6, %p59_p1  ;;  %p235_p10 = scmp.eq.s32.totalorder %s958_s28, 1 }
  0x1b   : > { %s1506_s11 = scalar_select %p50_p7, %s1394_s23, %s52_s30  }
  0x1c   : > { %p1508_p11 = por %p235_p10, %p65_p3  ;;  %p960_p12 = scmp.ge.s32.totalorder %s1406_s26, 2 }
  0x1d   : > { %1955 = sst [smem:[#allocation22_spill]] %s1506_s11  ;;  %p1055_p13 = scmp.lt.s32.totalorder %s1406_s26, 2 }
  0x1e   : > { %s1515_s13 = sand.u32 1, %s1394_s23   ;;  %s1521_s15 = smul.u32 6, %s1402_s25 }
  0x1f   : > { %s1518_s14 = sshll.u32 %s1515_s13, 1  ;;  %p1525_p0 = pnand %p1055_p13, %p1489_p4 }
  0x20   : > { %s276_s17 = sand.u32 1, %s1406_s26   ;;  %s1958_s1 = sld [smem:[#allocation24_spill]] }
  0x21   : > { %s280_s30 = scalar_lea.vmem [#allocation5], %s1518_s14  ;;  %p967_p1 = scmp.ge.s32.totalorder %s1406_s26, 1 }
  0x22   : > { %s291_s8 = sshll.u32 %s280_s30, 4  ;;  %s277_s7 = scalar_lea.sflag [#allocation6], %s276_s17  ;;  %s292_s8 = int_to_ptr.vmem [resolvable:$true] %s291_s8 }
  0x23   : > { %p383_p2 = scmp.lt.s32.totalorder %s1406_s26, 3  ;;  %s1959_s3 = sld [smem:[#allocation26_spill]] }
  0x24   : > { %s323_s30 = scalar_lea.vmem [#allocation8], %s1518_s14  ;;  %s1961_s0 = sld [smem:[#allocation23_spill]] }
  0x25   : > { %p1543_p3 = pnand %p967_p1, %p383_p2  ;;  %s1962_s2 = sld [smem:[#allocation25_spill]] }
  0x26   : > { %s800_s20 = scalar_lea.hbm %s1958_s1, %s1521_s15  ;;  %s334_s1 = sshll.u32 %s323_s30, 4  ;;  %s335_s1 = int_to_ptr.vmem [resolvable:$true] %s334_s1 }
  0x27   : > { %s801_s28 = scalar_lea.hbm %s800_s20, 2 }
  0x28   : > { %s289_s29 = sshll.u32 %s801_s28, 4  ;;  %s290_s29 = int_to_ptr.hbm [resolvable:$true] %s289_s29 }
  0x29   : > { %1038 = dma.hbm_to_vmem [thread:$0]  (!%p1525_p0), %s290_s29, 32, %s292_s8, %s277_s7  }
  0x2a   : > { %s815_s18 = scalar_lea.hbm %s1959_s3, %s1521_s15  ;;  %s320_s29 = scalar_lea.sflag [#allocation9], %s276_s17 }
  0x2b   : > { %s816_s20 = scalar_lea.hbm %s815_s18, 2  ;;  %s265_s8 = scalar_lea.hbm %s1961_s0, %s1521_s15 }
  0x2c   : > { %s332_s28 = sshll.u32 %s816_s20, 4  ;;  %s259_s3 = scalar_lea.vmem [#allocation2], %s1518_s14  ;;  %s333_s28 = int_to_ptr.hbm [resolvable:$true] %s332_s28 }
  0x2d   : > { %1044 = dma.hbm_to_vmem [thread:$0]  (!%p1525_p0), %s333_s28, 32, %s335_s1, %s320_s29  }
  0x2e   : > { %s269_s23 = sshll.u32 %s259_s3, 4  ;;  %s267_s18 = sshll.u32 %s265_s8, 4  ;;  %s270_s23 = int_to_ptr.vmem [resolvable:$true] %s269_s23  ;;  %s268_s18 = int_to_ptr.hbm [resolvable:$true] %s267_s18 }
  0x2f   : > { %s256_s20 = scalar_lea.sflag [#allocation3], %s1515_s13  ;;  %s308_s1 = scalar_lea.hbm %s1962_s2, %s1521_s15 }
  0x30   : > { %1035 = dma.hbm_to_vmem [thread:$0]  (!%p1525_p0), %s268_s18, 32, %s270_s23, %s256_s20  }
  0x31   : > { %s302_s28 = scalar_lea.vmem [#allocation7], %s1518_s14  ;;  %s310_s11 = sshll.u32 %s308_s1, 4  ;;  %s311_s11 = int_to_ptr.hbm [resolvable:$true] %s310_s11 }
  0x32   : > { %s312_s25 = sshll.u32 %s302_s28, 4  ;;  %s823_s0 = scalar_lea.hbm %s1939_s4, %s1521_s15  ;;  %s313_s25 = int_to_ptr.vmem [resolvable:$true] %s312_s25 }
  0x33   : > { %1041 = dma.hbm_to_vmem [thread:$0]  (!%p1525_p0), %s311_s11, 32, %s313_s25, %s277_s7  }
  0x34   : > { %s345_s23 = scalar_lea.vmem [#allocation10], %s1518_s14  ;;  %s824_s20 = scalar_lea.hbm %s823_s0, 2 }
  0x35   : > { %s356_s18 = sshll.u32 %s345_s23, 4  ;;  %s354_s30 = sshll.u32 %s824_s20, 4  ;;  %s357_s18 = int_to_ptr.vmem [resolvable:$true] %s356_s18  ;;  %s355_s30 = int_to_ptr.hbm [resolvable:$true] %s354_s30 }
  0x36   : > { %1047 = dma.hbm_to_vmem [thread:$0]  (!%p1525_p0), %s355_s30, 32, %s357_s18, %s320_s29  }
  0x37   : > { %s831_s28 = scalar_lea.hbm %s1940_s5, %s1521_s15  ;;  %s367_s2 = scalar_lea.vmem [#allocation11], %s1518_s14 }
  0x38   : > { %s378_s7 = sshll.u32 %s367_s2, 4  ;;  %s832_s25 = scalar_lea.hbm %s831_s28, 4  ;;  %s379_s7 = int_to_ptr.vmem [resolvable:$true] %s378_s7 }
  0x39   : > { %s376_s11 = sshll.u32 %s832_s25, 4  ;;  %s364_s3 = scalar_lea.sflag [#allocation12], %s1515_s13  ;;  %s377_s11 = int_to_ptr.hbm [resolvable:$true] %s376_s11 }
  0x3a   : > { %1050 = dma.hbm_to_vmem [thread:$0]  (!%p1525_p0), %s377_s11, 32, %s379_s7, %s364_s3  }
  0x3b   : > { %387 = sbr.rel (%p1543_p3) target bundleno = 131 (0x83), region = 44  ;;  %s1583_s0 = sand.u32 (!%p1543_p3), 1, %s1390_s22  }
  0x3c   : > { %s1586_s29 = sshll.u32 (!%p1543_p3), %s1583_s0, 1  ;;  %s390_s2 = scalar_lea.sflag (!%p1543_p3), [#allocation3], %s1583_s0 }
  0x3d   : > { %s393_s14 = scalar_lea.vmem (!%p1543_p3), [#allocation2], %s1586_s29 }
  0x40   : > { %1365 = dma.done.wait (%p1497_p8), %s390_s2, 32  }
  0x41   : > { %1367 = vsyncadd (%p1497_p8), %s390_s2, 4294967264  ;;  %s399_s13 = sand.u32 1, %s1477_s27   ;;  %s403_s16 = scalar_lea.vmem [#allocation5], %s1586_s29 }
  0x42   : > { %s400_s15 = scalar_lea.sflag [#allocation6], %s399_s13 }
  0x43   : > { %1369 = dma.done.wait (%p1497_p8), %s400_s15, 64  }
  0x44   : > { %1371 = vsyncadd (%p1497_p8), %s400_s15, 4294967232  ;;  %s413_s19 = scalar_lea.vmem [#allocation7], %s1586_s29  ;;  %s420_s8 = scalar_lea.sflag [#allocation9], %s399_s13 }
  0x45   : > { %s423_s23 = scalar_lea.vmem [#allocation8], %s1586_s29 }
  0x46   : > { %1373 = dma.done.wait (%p1497_p8), %s420_s8, 64  }
  0x47   : > { %1375 = vsyncadd (%p1497_p8), %s420_s8, 4294967232  ;;  %s433_s27 = scalar_lea.vmem [#allocation10], %s1586_s29  ;;  %s440_s18 = scalar_lea.sflag [#allocation12], %s1583_s0 }
  0x48   : > { %s443_s20 = scalar_lea.vmem [#allocation11], %s1586_s29 }
  0x49   : > { %1377 = dma.done.wait (%p1497_p8), %s440_s18, 32  }
  0x4a   : > { %1379 = vsyncadd (%p1497_p8), %s440_s18, 4294967264  ;;  %s1016_s30 = smul.u32 40, %s1583_s0  ;;  %v502_v0 = vlaneseq  ;;  %v1408_v2 = vmov 0.0   ;;  %v1638_v3 = vld [vmem:[%s393_s14] sm:$0x3]  ;;  %s737_s11 = scalar_lea.sflag [#allocation4], %s1583_s0 }
  0x4b   : > { %v1640_v4 = vld [vmem:[%s403_s16] sm:$0x3]  ;;  %v543_v5 = vand.u32 2147483647, %v1638_v3  ;;  %v1670_v11 = vld [vmem:[%s413_s19] sm:$0x3] }
  0x4c   : > { %vm1614_vm0 = vcmp.lt.s32.totalorder %v502_v0, 256  ;;  %s1618_s17 = scalar_lea.vmem [#allocation13], %s1016_s30  ;;  %v565_v6 = vand.u32 2147483647, %v1640_v4  ;;  %v640_v12 = vand.u32 2147483647, %v1670_v11  ;;  %vm588_vm1 = vcmp.gt.f32.partialorder %v1640_v4, %v1638_v3 }
  0x4d   : > { %506 = vst.msk [vmem:[%s1618_s17] sm:$0x3] %vm1614_vm0, %v1408_v2  ;;  %v544_v7 = vsub.f32 0.0, %v543_v5  ;;  %v1684_v13 = vld [vmem:[%s433_s27] sm:$0x3]  ;;  %vm587_vm2 = vcmp.gt.f32.partialorder %v1638_v3, %v1640_v4  ;;  %v590_v21 = vsel %vm588_vm1, %v1640_v4, 0.0 }
  0x4e   : > { %507 = vst.msk [vmem:[%s1618_s17 + $0x2] sm:$0x3] %vm1614_vm0, %v1408_v2  ;;  %v566_v8 = vsub.f32 0.0, %v565_v6  ;;  %v1695_v14 = vld [vmem:[%s443_s20] sm:$0x3]  ;;  %v641_v15 = vsub.f32 0.0, %v640_v12  ;;  %v562_v27 = vmul.f32 %v1638_v3, %v1684_v13  ;;  %v659_v58 = vmul.f32 %v1670_v11, %v1684_v13 }
  0x4f   : > { %508 = vst.msk [vmem:[%s1618_s17 + $0x4] sm:$0x3] %vm1614_vm0, %v1408_v2  ;;  %v545_v9 = vmul.f32 1.442695, %v544_v7  ;;  %v1702_v17 = vld [vmem:[%s423_s23] sm:$0x3]  ;;  %v1722_v26 = vadd.f32 %v1695_v14, %v1684_v13  ;;  %v584_v31 = vmul.f32 %v1640_v4, %v1695_v14 }
  0x50   : > { %509 = vst.msk [vmem:[%s1618_s17 + $0x6] sm:$0x3] %vm1614_vm0, %v1408_v2  ;;  %v567_v10 = vmul.f32 1.442695, %v566_v8  ;;  %v589_v22 = vsel %vm587_vm2, %v1638_v3, 0.0  ;;  %v561_v23 = vmax.f32 %v1638_v3, 0.0  ;;  %vm685_vm5 = vcmp.gt.f32.partialorder %v1702_v17, %v1670_v11 }
  0x51   : > { %510 = vst.msk [vmem:[%s1618_s17 + $0x8] sm:$0x3] %vm1614_vm0, %v1408_v2  ;;  %1108 = vpow2.f32 %v545_v9  ;;  %v642_v28 = vmul.f32 1.442695, %v641_v15  ;;  %v662_v29 = vand.u32 2147483647, %v1702_v17  ;;  %v591_v32 = vadd.f32 %v590_v21, %v589_v22 }
  0x52   : > { %511 = vst.msk [vmem:[%s1618_s17 + $0xa] sm:$0x3] %vm1614_vm0, %v1408_v2  ;;  %1110 = vpow2.f32 %v567_v10  ;;  %v583_v34 = vmax.f32 %v1640_v4, 0.0  ;;  %vm558_vm3 = vcmp.ge.f32.partialorder %v1638_v3, 0.0  ;;  %v563_v38 = vsub.f32 %v561_v23, %v562_v27  ;;  %s1017_s9 = smul.u32 40, %s1398_s24  ;;  %s748_s7 = sshll.u32 %s1618_s17, 4  ;;  %s749_s7 = int_to_ptr.vmem [resolvable:$true] %s748_s7 }
  0x53   : > { %512 = vst.msk [vmem:[%s1618_s17 + $0xc] sm:$0x3] %vm1614_vm0, %v1408_v2  ;;  %v663_v35 = vsub.f32 0.0, %v662_v29  ;;  %v596_v44 = vmax.f32 %v591_v32, 0.0  ;;  %v597_v45 = vmul.f32 %v591_v32, %v1722_v26  ;;  %vm580_vm6 = vcmp.ge.f32.partialorder %v1640_v4, 0.0  ;;  %s1332_s13 = scalar_lea.hbm %s1941_s6, 80 }
  0x54   : > { %513 = vst.msk [vmem:[%s1618_s17 + $0xe] sm:$0x3] %vm1614_vm0, %v1408_v2  ;;  %v585_v49 = vsub.f32 %v583_v34, %v584_v31  ;;  %v658_v53 = vmax.f32 %v1670_v11, 0.0  ;;  %v600_v61 = vld [vmem:[%s1618_s17] sm:$0x3]  ;;  %v687_v0 = vsel %vm685_vm5, %v1702_v17, 0.0  ;;  %vm684_vm8 = vcmp.gt.f32.partialorder %v1670_v11, %v1702_v17  ;;  %s747_s28 = scalar_lea.hbm %s1941_s6, %s1017_s9 }
  0x55   : > { %514 = vst.msk [vmem:[%s1618_s17 + $0x10] sm:$0x3] %vm1614_vm0, %v1408_v2  ;;  %v664_v40 = vmul.f32 1.442695, %v663_v35  ;;  %v598_v63 = vsub.f32 %v596_v44, %v597_v45  ;;  %v978_v7 = vld [vmem:[%s1618_s17 + $0x2] sm:$0x3] }
  0x56   : > { %515 = vst.msk [vmem:[%s1618_s17 + $0x12] sm:$0x3] %vm1614_vm0, %v1408_v2  ;;  %v980_v56 = vld [vmem:[%s1618_s17 + $0x4] sm:$0x3]  ;;  %vm655_vm10 = vcmp.ge.f32.partialorder %v1670_v11, 0.0  ;;  %vm677_vm12 = vcmp.ge.f32.partialorder %v1702_v17, 0.0 }
  0x57   : > { %516 = vst.msk [vmem:[%s1618_s17 + $0x14] sm:$0x3] %vm1614_vm0, %v1408_v2  ;;  %v1109_v16 = vpop.eup %1108  ;;  %s750_s25 = sshll.u32 %s747_s28, 4  ;;  %s751_s25 = int_to_ptr.hbm [resolvable:$true] %s750_s25 }
  0x58   : > { %517 = vst.msk [vmem:[%s1618_s17 + $0x16] sm:$0x3] %vm1614_vm0, %v1408_v2  ;;  %v1704_v18 = vpop.eup %1110  ;;  %v547_v19 = vadd.f32 1.0, %v1109_v16  ;;  %v550_v20 = vmul.f32 -0.5, %v1109_v16  ;;  %v553_v33 = vand.u32 2147483647, %v1109_v16 }
  0x59   : > { %518 = vst.msk [vmem:[%s1618_s17 + $0x18] sm:$0x3] %vm1614_vm0, %v1408_v2  ;;  %v569_v24 = vadd.f32 1.0, %v1704_v18  ;;  %v572_v25 = vmul.f32 -0.5, %v1704_v18  ;;  %v575_v39 = vand.u32 2147483647, %v1704_v18 }
  0x5a   : > { %519 = vst.msk [vmem:[%s1618_s17 + $0x1a] sm:$0x3] %vm1614_vm0, %v1408_v2  ;;  %1112 = vlog2.f32 %v547_v19  ;;  %v551_v30 = vadd.f32 1.0, %v550_v20  ;;  %vm1737_vm4 = vcmp.lt.f32.partialorder %v553_v33, 0.0004427343  ;;  %s1326_s3 = sshra.s32 %s751_s25, 4  ;;  %s1327_s3 = int_to_ptr.hbm [resolvable:$true] %s1326_s3 }
  0x5b   : > { %520 = vst.msk [vmem:[%s1618_s17 + $0x1c] sm:$0x3] %vm1614_vm0, %v1408_v2  ;;  %1114 = vrcp.f32 %v547_v19  ;;  %v573_v36 = vadd.f32 1.0, %v572_v25  ;;  %vm1753_vm7 = vcmp.lt.f32.partialorder %v575_v39, 0.0004427343  ;;  %v686_v39 = vsel %vm684_vm8, %v1670_v11, 0.0  ;;  %p1333_p7 = scmp.lt.s32.totalorder %s1327_s3, %s1941_s6 }
  0x5c   : > { %521 = vst.msk [vmem:[%s1618_s17 + $0x1e] sm:$0x3] %vm1614_vm0, %v1408_v2  ;;  %1116 = vlog2.f32 %v569_v24  ;;  %v552_v43 = vmul.f32 %v1109_v16, %v551_v30  ;;  %v986_v9 = vld [vmem:[%s1618_s17 + $0xa] sm:$0x3]  ;;  %v984_v23 = vld [vmem:[%s1618_s17 + $0x8] sm:$0x3]  ;;  %v688_v48 = vadd.f32 %v687_v0, %v686_v39 }
  0x5d   : > { %522 = vst.msk [vmem:[%s1618_s17 + $0x20] sm:$0x3] %vm1614_vm0, %v1408_v2  ;;  %1118 = vrcp.f32 %v569_v24  ;;  %v574_v52 = vmul.f32 %v1704_v18, %v573_v36  ;;  %v988_v29 = vld [vmem:[%s1618_s17 + $0xc] sm:$0x3]  ;;  %v992_v34 = vld [vmem:[%s1618_s17 + $0x10] sm:$0x3] }
  0x5e   : > { %523 = vst.msk [vmem:[%s1618_s17 + $0x22] sm:$0x3] %vm1614_vm0, %v1408_v2  ;;  %1120 = vpow2.f32 %v642_v28  ;;  %v994_v57 = vld [vmem:[%s1618_s17 + $0x12] sm:$0x3]  ;;  %s1328_s29 = scalar_lea.hbm %s1327_s3, 40 }
  0x5f   : > { %524 = vst.msk [vmem:[%s1618_s17 + $0x24] sm:$0x3] %vm1614_vm0, %v1408_v2  ;;  %1122 = vpow2.f32 %v664_v40  ;;  %p1329_p4 = scmp.ne.s32.totalorder %s1327_s3, %s1328_s29  ;;  %p1334_p8 = scmp.lt.s32.totalorder %s1332_s13, %s1328_s29 }
  0x60   : > { %525 = vst.msk [vmem:[%s1618_s17 + $0x26] sm:$0x3] %vm1614_vm0, %v1408_v2  ;;  %v1113_v46 = vpop.eup %1112 }
  0x61   : > { %v1115_v50 = vpop.eup %1114  ;;  %v549_v51 = vmul.f32 0.6931472, %v1113_v46  ;;  %p1330_p5 = pnand %p1329_p4, %p1501_p9  ;;  %p1335_p10 = por %p1334_p8, %p1333_p7 }
  0x62   : > { %v1117_v54 = vpop.eup %1116  ;;  %v559_v55 = vmul.f32 %v1115_v50, %v1109_v16  ;;  %v982_v16 = vld [vmem:[%s1618_s17 + $0x6] sm:$0x3] }
  0x63   : > { %v1119_v59 = vpop.eup %1118  ;;  %v555_v60 = vsel %vm1737_vm4, %v552_v43, %v549_v51  ;;  %v571_v62 = vmul.f32 0.6931472, %v1117_v54  ;;  %v680_v51 = vmax.f32 %v1702_v17, 0.0  ;;  %p1331_p6 = pneg %p1330_p5 }
  0x64   : > { %v1766_v2 = vpop.eup %1120  ;;  %v564_v5 = vadd.f32 %v563_v38, %v555_v60  ;;  %v560_v6 = vsel %vm558_vm3, %v1115_v50, %v559_v55  ;;  %v581_v8 = vmul.f32 %v1119_v59, %v1704_v18 }
  0x65   : > { %v603_v10 = vmul.f32 %v560_v6, %v1684_v13  ;;  %v610_v12 = vadd.f32 %v980_v56, %v560_v6  ;;  %v577_v15 = vsel %vm1753_vm7, %v574_v52, %v571_v62  ;;  %v644_v19 = vadd.f32 1.0, %v1766_v2  ;;  %v1123_v30 = vpop.eup %1122  ;;  %p1336_p13 = pnand %p1335_p10, %p1331_p6 }
  0x66   : > { %v974_v37 = vld [vmem:[%s1618_s17 + $0x24] sm:$0x3]  ;;  %v601_v20 = vadd.f32 %v600_v61, %v564_v5  ;;  %v586_v21 = vadd.f32 %v585_v49, %v577_v15  ;;  %v594_v18 = vsel %vm588_vm1, %v577_v15, 0.6931472  ;;  %v582_v22 = vsel %vm580_vm6, %v1119_v59, %v581_v8  ;;  %v998_v59 = vld [vmem:[%s1618_s17 + $0x16] sm:$0x3] }
  0x67   : > { %v531_v41 = vadd.f32 %v974_v37, %v1684_v13  ;;  %v976_v42 = vld [vmem:[%s1618_s17 + $0x26] sm:$0x3]  ;;  %v606_v24 = vadd.f32 %v978_v7, %v603_v10  ;;  %981 = vst.msk [vmem:[%s1618_s17 + $0x4] sm:$0x3] %vm1614_vm0, %v610_v12  ;;  %v616_v25 = vmul.f32 %v582_v22, %v1695_v14  ;;  %v623_v27 = vadd.f32 %v986_v9, %v582_v22  ;;  %v990_v37 = vld [vmem:[%s1618_s17 + $0xe] sm:$0x3] }
  0x68   : > { %v539_v47 = vadd.f32 %v976_v42, %v1695_v14  ;;  %v595_v28 = vsel %vm587_vm2, %v555_v60, %v594_v18  ;;  %602 = vst.msk [vmem:[%s1618_s17] sm:$0x3] %vm1614_vm0, %v601_v20  ;;  %v614_v31 = vadd.f32 %v982_v16, %v586_v21  ;;  %v592_v33 = vsel %vm588_vm1, %v582_v22, 0.5  ;;  %v1004_v16 = vld [vmem:[%s1618_s17 + $0x1c] sm:$0x3] }
  0x69   : > { %975 = vst.msk [vmem:[%s1618_s17 + $0x24] sm:$0x3] %vm1614_vm0, %v531_v41  ;;  %v599_v32 = vadd.f32 %v598_v63, %v595_v28  ;;  %1124 = vlog2.f32 %v644_v19  ;;  %v619_v35 = vadd.f32 %v984_v23, %v616_v25  ;;  %v593_v36 = vsel %vm587_vm2, %v560_v6, %v592_v33  ;;  %v996_v6 = vld [vmem:[%s1618_s17 + $0x14] sm:$0x3]  ;;  %v1000_v18 = vld [vmem:[%s1618_s17 + $0x18] sm:$0x3] }
  0x6a   : > { %977 = vst.msk [vmem:[%s1618_s17 + $0x26] sm:$0x3] %vm1614_vm0, %v539_v47  ;;  %v647_v38 = vmul.f32 -0.5, %v1766_v2  ;;  %v629_v41 = vmul.f32 %v593_v36, %v1722_v26  ;;  %v650_v42 = vand.u32 2147483647, %v1766_v2  ;;  %1126 = vrcp.f32 %v644_v19 }
  0x6b   : > { %979 = vst.msk [vmem:[%s1618_s17 + $0x2] sm:$0x3] %vm1614_vm0, %v606_v24  ;;  %v627_v40 = vadd.f32 %v988_v29, %v599_v32  ;;  %v636_v3 = vadd.f32 %v992_v34, %v593_v36  ;;  %v666_v43 = vadd.f32 1.0, %v1123_v30  ;;  %v669_v45 = vmul.f32 -0.5, %v1123_v30  ;;  %v1002_v22 = vld [vmem:[%s1618_s17 + $0x1a] sm:$0x3] }
  0x6c   : > { %983 = vst.msk [vmem:[%s1618_s17 + $0x6] sm:$0x3] %vm1614_vm0, %v614_v31  ;;  %v648_v4 = vadd.f32 1.0, %v647_v38  ;;  %v632_v44 = vadd.f32 %v990_v37, %v629_v41  ;;  %v660_v47 = vsub.f32 %v658_v53, %v659_v58  ;;  %vm651_vm9 = vcmp.lt.f32.partialorder %v650_v42, 0.0004427343 }
  0x6d   : > { %985 = vst.msk [vmem:[%s1618_s17 + $0x8] sm:$0x3] %vm1614_vm0, %v619_v35  ;;  %1128 = vlog2.f32 %v666_v43  ;;  %v670_v50 = vadd.f32 1.0, %v669_v45  ;;  %v672_v54 = vand.u32 2147483647, %v1123_v30  ;;  %v681_v53 = vmul.f32 %v1702_v17, %v1695_v14 }
  0x6e   : > { %987 = vst.msk [vmem:[%s1618_s17 + $0xa] sm:$0x3] %vm1614_vm0, %v623_v27  ;;  %v649_v46 = vmul.f32 %v1766_v2, %v648_v4  ;;  %1130 = vrcp.f32 %v666_v43  ;;  %v693_v60 = vmax.f32 %v688_v48, 0.0  ;;  %v694_v61 = vmul.f32 %v688_v48, %v1722_v26  ;;  %v1006_v25 = vld [vmem:[%s1618_s17 + $0x1e] sm:$0x3] }
  0x6f   : > { %989 = vst.msk [vmem:[%s1618_s17 + $0xc] sm:$0x3] %vm1614_vm0, %v627_v40  ;;  %v1125_v49 = vpop.eup %1124  ;;  %v671_v63 = vmul.f32 %v1123_v30, %v670_v50  ;;  %vm673_vm11 = vcmp.lt.f32.partialorder %v672_v54, 0.0004427343  ;;  %v682_v7 = vsub.f32 %v680_v51, %v681_v53  ;;  %v1010_v31 = vld [vmem:[%s1618_s17 + $0x22] sm:$0x3] }
  0x70   : > { %991 = vst.msk [vmem:[%s1618_s17 + $0xe] sm:$0x3] %vm1614_vm0, %v632_v44  ;;  %v646_v52 = vmul.f32 0.6931472, %v1125_v49  ;;  %v1127_v55 = vpop.eup %1126  ;;  %v695_v19 = vsub.f32 %v693_v60, %v694_v61 }
  0x71   : > { %993 = vst.msk [vmem:[%s1618_s17 + $0x10] sm:$0x3] %vm1614_vm0, %v636_v3  ;;  %v656_v58 = vmul.f32 %v1127_v55, %v1766_v2 }
  0x72   : > { %v652_v56 = vsel %vm651_vm9, %v649_v46, %v646_v52 }
  0x73   : > { %v661_v62 = vadd.f32 %v660_v47, %v652_v56  ;;  %v1129_v0 = vpop.eup %1128  ;;  %v657_v5 = vsel %vm655_vm10, %v1127_v55, %v656_v58 }
  0x74   : > { %v1131_v2 = vpop.eup %1130  ;;  %v701_v9 = vmul.f32 %v657_v5, %v1684_v13  ;;  %v708_v10 = vadd.f32 %v998_v59, %v657_v5  ;;  %v668_v12 = vmul.f32 0.6931472, %v1129_v0 }
  0x75   : > { %v699_v8 = vadd.f32 %v994_v57, %v661_v62  ;;  %v678_v15 = vmul.f32 %v1131_v2, %v1123_v30 }
  0x76   : > { %v704_v20 = vadd.f32 %v996_v6, %v701_v9  ;;  %v674_v21 = vsel %vm673_vm11, %v671_v63, %v668_v12  ;;  %999 = vst.msk [vmem:[%s1618_s17 + $0x16] sm:$0x3] %vm1614_vm0, %v708_v10 }
  0x77   : > { %995 = vst.msk [vmem:[%s1618_s17 + $0x12] sm:$0x3] %vm1614_vm0, %v699_v8  ;;  %v683_v23 = vadd.f32 %v682_v7, %v674_v21  ;;  %v691_v13 = vsel %vm685_vm5, %v674_v21, 0.6931472  ;;  %v679_v24 = vsel %vm677_vm12, %v1131_v2, %v678_v15 }
  0x78   : > { %997 = vst.msk [vmem:[%s1618_s17 + $0x14] sm:$0x3] %vm1614_vm0, %v704_v20  ;;  %v714_v27 = vmul.f32 %v679_v24, %v1695_v14  ;;  %v721_v28 = vadd.f32 %v1004_v16, %v679_v24  ;;  %v692_v29 = vsel %vm684_vm8, %v652_v56, %v691_v13  ;;  %v689_v30 = vsel %vm685_vm5, %v679_v24, 0.5  ;;  %v1008_v14 = vld [vmem:[%s1618_s17 + $0x20] sm:$0x3] }
  0x79   : > { %v712_v32 = vadd.f32 %v1000_v18, %v683_v23  ;;  %v696_v33 = vadd.f32 %v695_v19, %v692_v29  ;;  %v690_v34 = vsel %vm684_vm8, %v657_v5, %v689_v30 }
  0x7a   : > { %v717_v35 = vadd.f32 %v1002_v22, %v714_v27  ;;  %1005 = vst.msk [vmem:[%s1618_s17 + $0x1c] sm:$0x3] %vm1614_vm0, %v721_v28  ;;  %v727_v36 = vmul.f32 %v690_v34, %v1722_v26  ;;  %v734_v38 = vadd.f32 %v1010_v31, %v690_v34 }
  0x7b   : > { %1001 = vst.msk [vmem:[%s1618_s17 + $0x18] sm:$0x3] %vm1614_vm0, %v712_v32  ;;  %v725_v37 = vadd.f32 %v1006_v25, %v696_v33 }
  0x7c   : > { %1003 = vst.msk [vmem:[%s1618_s17 + $0x1a] sm:$0x3] %vm1614_vm0, %v717_v35  ;;  %v730_v11 = vadd.f32 %v1008_v14, %v727_v36 }
  0x7d   : > { %1007 = vst.msk [vmem:[%s1618_s17 + $0x1e] sm:$0x3] %vm1614_vm0, %v725_v37 }
  0x7e   : > { %1009 = vst.msk [vmem:[%s1618_s17 + $0x20] sm:$0x3] %vm1614_vm0, %v730_v11 }
  0x7f   : > { %1011 = vst.msk [vmem:[%s1618_s17 + $0x22] sm:$0x3] %vm1614_vm0, %v734_v38 }
  0x80   : > { %1339 = shalt.err (!%p1336_p13)
}
  0x81   : > { %s1409_s0 = smov 32   ;;  %s1410_s19 = smov 2  }
  0x82   : > { %1030 = dma.vmem_to_hbm [thread:$0]  (%p1501_p9), %s749_s7, 640, %s751_s25, %s737_s11, %s1409_s0, %s1409_s0, %s1410_s19  }
  0x83 PF: > { %s765_s8 = sand.u32 1, %s1386_s21   ;;  %p1052_p0 = pnand %p960_p12, %p1508_p11 }
  0x84   : > { %s766_s23 = scalar_lea.sflag [#allocation4], %s765_s8 }
  0x85   : > { %p1053_p1 = pneg %p1052_p0 }
  0x87   : > { %1381 = dma.done.wait (%p1053_p1), %s766_s23, 640  }
  0x88   : > { %1383 = vsyncadd (%p1053_p1), %s766_s23, 4294966656  ;;  %s31_s26 = sadd.s32 1, %s1406_s26   ;;  %s1969_s27 = sld [smem:[#allocation19_spill]] }
  0x89   : > { %p28_p2 = scmp.ge.s32.totalorder %s31_s26, 4   ;;  %s1970_s23 = sld [smem:[#allocation22_spill]] }
  0x8a   : > { %s1971_s24 = sld [smem:[#allocation20_spill]]  ;;  %s1973_s21 = smov %s1390_s22 }
  0x8b   : > { %s1972_s25 = sld [smem:[#allocation21_spill]]  ;;  %30 = sbr.rel (!%p28_p2) target bundleno = 17 (0x11), region = 173 }
  0x8e   : > { %s1974_s22 = smov %s1969_s27 }
  0x90   :  { %772 = vsyncpa [#allocation3], 1 }
  0x91   :  { %774 = vsyncpa [#allocation3 + $0x1], 1 }
  0x92   :  { %775 = vsyncpa [#allocation6], 1 }
  0x93   :  { %777 = vsyncpa [#allocation6 + $0x1], 1 }
  0x94   :  { %778 = vsyncpa [#allocation9], 1 }
  0x95   :  { %780 = vsyncpa [#allocation9 + $0x1], 1 }
  0x96   :  { %781 = vsyncpa [#allocation12], 1 }
  0x97   :  { %783 = vsyncpa [#allocation12 + $0x1], 1 }
  0x98   :  { %784 = vsyncpa [#allocation4], 1 }
  0x99   :  { %786 = vsyncpa [#allocation4 + $0x1], 1 }

</bundles_post_ra>
